<compile_context>
chip_gen: v7x
topology: tpu7x:2x2x1
jax: 0.10.0
libtpu: 0.0.40
codegen_flags: <defaults>
</compile_context>

<pallas_src>
import functools

import jax
import jax.numpy as jnp
from jax.experimental import pallas as pl
from jax.experimental.pallas import tpu as pltpu

SUBLANE_BF16 = 16      # bf16 activation tiles pack 16 rows per sublane group
MAX_BLOCK_B = 1024     # rows per grid step; large tiles amortize ~0.35us/step


def _cdiv(a, b):
    return -(-a // b)


def _round_up(n, m):
    return _cdiv(n, m) * m


def _tensorcores_per_chip():
    """Best-effort detection of TensorCores per chip (v7x: 2, v5e/v6e: 1).

    Falls back to 1 (single grid step) if detection fails, which is the
    right default for single-TC chips and still correct on v7x."""
    try:
        info = pltpu.get_tpu_info()
        for name in ("num_tensorcores", "tensorcores_per_chip", "num_cores"):
            n = getattr(info, name, None)
            if n:
                return int(n)
    except Exception:
        pass
    try:
        n = getattr(jax.devices()[0], "num_cores", None)
        if n:
            return int(n)
    except Exception:
        pass
    return 1


def _mlp_kernel(x_ref, w1_ref, b1_ref, w2_ref, b2_ref, w3_ref, b3_ref, o_ref):
    # Fully fused 3-layer MLP on one batch tile; everything resident in VMEM.
    # bf16 matmul operands, f32 accumulation, f32 bias+ReLU epilogue.
    x = x_ref[...]
    h1 = jnp.dot(x, w1_ref[...], preferred_element_type=jnp.float32) + b1_ref[...]
    h1 = jnp.maximum(h1, 0.0)
    h2 = jnp.dot(h1.astype(jnp.bfloat16), w2_ref[...],
                 preferred_element_type=jnp.float32) + b2_ref[...]
    h2 = jnp.maximum(h2, 0.0)
    y = jnp.dot(h2.astype(jnp.bfloat16), w3_ref[...],
                preferred_element_type=jnp.float32) + b3_ref[...]
    o_ref[...] = y.astype(o_ref.dtype)


def prepare_params(w1, b1, w2, b2, w3, b3):
    """One-time parameter prep (call at init, not per forward):
      * weights laid out (in_features, out_features), cast to bf16 operands
      * biases kept in f32 as (1, out_features) rows
    No feature-dim padding: true widths are legal block shapes and avoid
    padded HBM traffic."""
    def prep_w(w):
        return jnp.asarray(w, jnp.bfloat16)

    def prep_b(b):
        return jnp.asarray(b, jnp.float32).reshape(1, -1)

    return (prep_w(w1), prep_b(b1), prep_w(w2), prep_b(b2), prep_w(w3), prep_b(b3))


def _choose_block_b(batch, n_cores):
    """Single grid step whenever the whole batch fits one tile on a 1-TC chip;
    otherwise split evenly across TensorCores / MAX_BLOCK_B-sized tiles,
    aligned to the bf16 sublane pack (16 rows)."""
    n_tiles = max(n_cores, _cdiv(batch, MAX_BLOCK_B))
    if n_tiles <= 1:
        return batch                       # block == full batch dim (always legal)
    return _round_up(_cdiv(batch, n_tiles), SUBLANE_BF16)


@functools.partial(jax.jit, static_argnames=("block_b",))
def _mlp_forward_tiled(x, w1, b1, w2, b2, w3, b3, *, block_b):
    b, in_sz = x.shape
    h1_sz = w1.shape[1]
    h2_sz = w2.shape[1]
    out_sz = w3.shape[1]

    # Cast activations once to bf16 (half the DMA bytes into the kernel).
    x = x.astype(jnp.bfloat16)

    bp = _round_up(b, block_b)
    if bp != b:
        # Padded rows are NOT zeros after the first bias add (bias propagates
        # through the layers); they are sliced off below and never returned.
        x = jnp.pad(x, ((0, bp - b), (0, 0)))

    grid = (bp // block_b,)

    # Truthful cost estimate from the logical (unpadded-feature) dims.
    flops = 2 * bp * (in_sz * h1_sz + h1_sz * h2_sz + h2_sz * out_sz)
    bytes_accessed = (
        bp * in_sz * 2                                   # x (bf16)
        + (w1.size + w2.size + w3.size) * 2              # weights (bf16)
        + (b1.size + b2.size + b3.size) * 4              # biases (f32)
        + bp * out_sz * 4                                # output (f32)
    )

    y = pl.pallas_call(
        _mlp_kernel,
        out_shape=jax.ShapeDtypeStruct((bp, out_sz), jnp.float32),
        grid_spec=pltpu.PrefetchScalarGridSpec(
            num_scalar_prefetch=0,
            grid=grid,
            in_specs=[
                # batch tile of activations (true feature width)
                pl.BlockSpec((block_b, in_sz), lambda i: (i, 0)),
                # weights / biases: full arrays, block-invariant across grid
                pl.BlockSpec((in_sz, h1_sz), lambda i: (0, 0)),
                pl.BlockSpec((1, h1_sz), lambda i: (0, 0)),
                pl.BlockSpec((h1_sz, h2_sz), lambda i: (0, 0)),
                pl.BlockSpec((1, h2_sz), lambda i: (0, 0)),
                pl.BlockSpec((h2_sz, out_sz), lambda i: (0, 0)),
                pl.BlockSpec((1, out_sz), lambda i: (0, 0)),
            ],
            out_specs=pl.BlockSpec((block_b, out_sz), lambda i: (i, 0)),
        ),
        compiler_params=pltpu.CompilerParams(
            dimension_semantics=("parallel",),
        ),
        cost_estimate=pl.CostEstimate(
            flops=int(flops), transcendentals=0, bytes_accessed=int(bytes_accessed)
        ),
    )(x, w1, b1, w2, b2, w3, b3)

    return y[:b] if bp != b else y


def mlp_forward(x, prepared_params, *, block_b=None):
    """x: (B, input_size) float32/bf16. prepared_params: output of
    prepare_params(). Returns (B, output_size) float32."""
    if block_b is None:
        block_b = _choose_block_b(x.shape[0], _tensorcores_per_chip())
    return _mlp_forward_tiled(x, *prepared_params, block_b=block_b)


def init_linear_params(key, in_features, out_features, dtype=jnp.float32):
    """PyTorch nn.Linear default init: U(-1/sqrt(fan_in), 1/sqrt(fan_in)).
    Weight returned transposed to (in_features, out_features); bias (out,)."""
    k_w, k_b = jax.random.split(key)
    bound = 1.0 / jnp.sqrt(jnp.asarray(in_features, dtype))
    w = jax.random.uniform(
        k_w, (in_features, out_features), dtype, minval=-bound, maxval=bound
    )
    b = jax.random.uniform(k_b, (out_features,), dtype, minval=-bound, maxval=bound)
    return w, b


def reference_forward(x, w1, b1, w2, b2, w3, b3, matmul_dtype=jnp.float32):
    def mm(a, w):
        return jnp.dot(a.astype(matmul_dtype), w.astype(matmul_dtype),
                       preferred_element_type=jnp.float32)

    h1 = jnp.maximum(mm(x, w1) + b1, 0.0)
    h2 = jnp.maximum(mm(h1, w2) + b2, 0.0)
    return mm(h2, w3) + b3


if __name__ == "__main__":
    # Small shapes consistent with the DQN MLP (state features -> Q values).
    batch = 64
    input_size = 16
    hidden_size_1 = 32
    hidden_size_2 = 32
    output_size = 4

    key = jax.random.PRNGKey(0)
    k_x, k1, k2, k3 = jax.random.split(key, 4)

    x = jax.random.normal(k_x, (batch, input_size), jnp.float32)
    w1, b1 = init_linear_params(k1, input_size, hidden_size_1)
    w2, b2 = init_linear_params(k2, hidden_size_1, hidden_size_2)
    w3, b3 = init_linear_params(k3, hidden_size_2, output_size)

    # Prepare (cast / reshape) parameters ONCE.
    prepared = prepare_params(w1, b1, w2, b2, w3, b3)

    y = mlp_forward(x, prepared)
    jax.block_until_ready(y)

    # Reference with the same bf16 matmul operands + f32 accumulation (tight
    # tolerance), plus a sanity check against the full-f32 reference.
    y_ref_bf16 = reference_forward(x, w1, b1, w2, b2, w3, b3,
                                   matmul_dtype=jnp.bfloat16)
    y_ref_f32 = reference_forward(x, w1, b1, w2, b2, w3, b3)

    assert y.shape == (batch, output_size)
    assert jnp.allclose(y, y_ref_bf16, atol=1e-2, rtol=1e-2)
    assert jnp.allclose(y, y_ref_f32, atol=5e-2, rtol=5e-2)

    print("KERNEL_OK")
</pallas_src>

<mosaic_0001>
module attributes {stable_mosaic.version = 11 : i64} {
  func.func @_mlp_kernel(%arg0: i32, %arg1: memref<64x16xbf16, #tpu.memory_space<vmem>>, %arg2: memref<16x32xbf16, #tpu.memory_space<vmem>>, %arg3: memref<1x32xf32, #tpu.memory_space<vmem>>, %arg4: memref<32x32xbf16, #tpu.memory_space<vmem>>, %arg5: memref<1x32xf32, #tpu.memory_space<vmem>>, %arg6: memref<32x4xbf16, #tpu.memory_space<vmem>>, %arg7: memref<1x4xf32, #tpu.memory_space<vmem>>, %arg8: memref<64x4xf32, #tpu.memory_space<vmem>>) attributes {dimension_semantics = [#tpu.dimension_semantics<parallel>], iteration_bounds = array<i64: 1>, scalar_prefetch = 0 : i64, scratch_operands = 0 : i64, tpu.core_type = #tpu.core_type<tc>, window_params = [{transform_indices = @transform_0, window_bounds = array<i64: 64, 16>}, {pipeline_mode = #tpu.pipeline_mode<synchronous>, transform_indices = @transform_1, window_bounds = array<i64: 16, 32>}, {pipeline_mode = #tpu.pipeline_mode<synchronous>, transform_indices = @transform_2, window_bounds = array<i64: 1, 32>}, {pipeline_mode = #tpu.pipeline_mode<synchronous>, transform_indices = @transform_3, window_bounds = array<i64: 32, 32>}, {pipeline_mode = #tpu.pipeline_mode<synchronous>, transform_indices = @transform_4, window_bounds = array<i64: 1, 32>}, {pipeline_mode = #tpu.pipeline_mode<synchronous>, transform_indices = @transform_5, window_bounds = array<i64: 32, 4>}, {pipeline_mode = #tpu.pipeline_mode<synchronous>, transform_indices = @transform_6, window_bounds = array<i64: 1, 4>}, {transform_indices = @transform_7, window_bounds = array<i64: 64, 4>}]} {
    %c0 = arith.constant 0 : index
    %c0_0 = arith.constant 0 : index
    %0 = vector.load %arg1[%c0, %c0_0] : memref<64x16xbf16, #tpu.memory_space<vmem>>, vector<64x16xbf16>
    %c0_1 = arith.constant 0 : index
    %c0_2 = arith.constant 0 : index
    %1 = vector.load %arg2[%c0_1, %c0_2] : memref<16x32xbf16, #tpu.memory_space<vmem>>, vector<16x32xbf16>
    %cst = arith.constant dense<0.000000e+00> : vector<64x32xf32>
    %2 = tpu.matmul %0, %1, %cst {dimension_numbers = #tpu.dot_dimension_numbers<[1], [0], [0], [1], [0, 0, 1, 1], [], []>} : vector<64x16xbf16>, vector<16x32xbf16>, vector<64x32xf32> -> vector<64x32xf32>
    %c0_3 = arith.constant 0 : index
    %c0_4 = arith.constant 0 : index
    %3 = vector.load %arg3[%c0_3, %c0_4] : memref<1x32xf32, #tpu.memory_space<vmem>>, vector<1x32xf32>
    %4 = vector.broadcast %3 : vector<1x32xf32> to vector<64x32xf32>
    %5 = arith.addf %2, %4 : vector<64x32xf32>
    %cst_5 = arith.constant 0.000000e+00 : f32
    %6 = vector.broadcast %cst_5 : f32 to vector<64x32xf32>
    %7 = arith.maximumf %5, %6 : vector<64x32xf32>
    %8 = arith.truncf %7 : vector<64x32xf32> to vector<64x32xbf16>
    %c0_6 = arith.constant 0 : index
    %c0_7 = arith.constant 0 : index
    %9 = vector.load %arg4[%c0_6, %c0_7] : memref<32x32xbf16, #tpu.memory_space<vmem>>, vector<32x32xbf16>
    %cst_8 = arith.constant dense<0.000000e+00> : vector<64x32xf32>
    %10 = tpu.matmul %8, %9, %cst_8 {dimension_numbers = #tpu.dot_dimension_numbers<[1], [0], [0], [1], [0, 0, 1, 1], [], []>} : vector<64x32xbf16>, vector<32x32xbf16>, vector<64x32xf32> -> vector<64x32xf32>
    %c0_9 = arith.constant 0 : index
    %c0_10 = arith.constant 0 : index
    %11 = vector.load %arg5[%c0_9, %c0_10] : memref<1x32xf32, #tpu.memory_space<vmem>>, vector<1x32xf32>
    %12 = vector.broadcast %11 : vector<1x32xf32> to vector<64x32xf32>
    %13 = arith.addf %10, %12 : vector<64x32xf32>
    %cst_11 = arith.constant 0.000000e+00 : f32
    %14 = vector.broadcast %cst_11 : f32 to vector<64x32xf32>
    %15 = arith.maximumf %13, %14 : vector<64x32xf32>
    %16 = arith.truncf %15 : vector<64x32xf32> to vector<64x32xbf16>
    %c0_12 = arith.constant 0 : index
    %c0_13 = arith.constant 0 : index
    %17 = vector.load %arg6[%c0_12, %c0_13] : memref<32x4xbf16, #tpu.memory_space<vmem>>, vector<32x4xbf16>
    %cst_14 = arith.constant dense<0.000000e+00> : vector<64x4xf32>
    %18 = tpu.matmul %16, %17, %cst_14 {dimension_numbers = #tpu.dot_dimension_numbers<[1], [0], [0], [1], [0, 0, 1, 1], [], []>} : vector<64x32xbf16>, vector<32x4xbf16>, vector<64x4xf32> -> vector<64x4xf32>
    %c0_15 = arith.constant 0 : index
    %c0_16 = arith.constant 0 : index
    %19 = vector.load %arg7[%c0_15, %c0_16] : memref<1x4xf32, #tpu.memory_space<vmem>>, vector<1x4xf32>
    %20 = vector.broadcast %19 : vector<1x4xf32> to vector<64x4xf32>
    %21 = arith.addf %18, %20 : vector<64x4xf32>
    %c0_17 = arith.constant 0 : index
    %c0_18 = arith.constant 0 : index
    %22 = vector.load %arg8[%c0_17, %c0_18] : memref<64x4xf32, #tpu.memory_space<vmem>>, vector<64x4xf32>
    tpu.vector_store %arg8[%c0_17, %c0_18], %21 {strides = array<i32>} : memref<64x4xf32, #tpu.memory_space<vmem>>, vector<64x4xf32>,
    return
  }
  func.func @transform_0(%arg0: i32) -> (i32, i32) {
    %c0_i32 = arith.constant 0 : i32
    %c0_i32_0 = arith.constant 0 : i32
    return %arg0, %c0_i32 : i32, i32
  }
  func.func @transform_1(%arg0: i32) -> (i32, i32) {
    %c0_i32 = arith.constant 0 : i32
    %c0_i32_0 = arith.constant 0 : i32
    %c0_i32_1 = arith.constant 0 : i32
    return %c0_i32, %c0_i32_0 : i32, i32
  }
  func.func @transform_2(%arg0: i32) -> (i32, i32) {
    %c0_i32 = arith.constant 0 : i32
    %c0_i32_0 = arith.constant 0 : i32
    %c0_i32_1 = arith.constant 0 : i32
    return %c0_i32, %c0_i32_0 : i32, i32
  }
  func.func @transform_3(%arg0: i32) -> (i32, i32) {
    %c0_i32 = arith.constant 0 : i32
    %c0_i32_0 = arith.constant 0 : i32
    %c0_i32_1 = arith.constant 0 : i32
    return %c0_i32, %c0_i32_0 : i32, i32
  }
  func.func @transform_4(%arg0: i32) -> (i32, i32) {
    %c0_i32 = arith.constant 0 : i32
    %c0_i32_0 = arith.constant 0 : i32
    %c0_i32_1 = arith.constant 0 : i32
    return %c0_i32, %c0_i32_0 : i32, i32
  }
  func.func @transform_5(%arg0: i32) -> (i32, i32) {
    %c0_i32 = arith.constant 0 : i32
    %c0_i32_0 = arith.constant 0 : i32
    %c0_i32_1 = arith.constant 0 : i32
    return %c0_i32, %c0_i32_0 : i32, i32
  }
  func.func @transform_6(%arg0: i32) -> (i32, i32) {
    %c0_i32 = arith.constant 0 : i32
    %c0_i32_0 = arith.constant 0 : i32
    %c0_i32_1 = arith.constant 0 : i32
    return %c0_i32, %c0_i32_0 : i32, i32
  }
  func.func @transform_7(%arg0: i32) -> (i32, i32) {
    %c0_i32 = arith.constant 0 : i32
    %c0_i32_0 = arith.constant 0 : i32
    return %arg0, %c0_i32 : i32, i32
  }
}

</mosaic_0001>

<bundles_post_ra>
// kernel: _mlp_forward_tiled.1
= control target key start
LH: loop header
LB: loop body
LE: loop exit
PB: predicated region body
PF: predicated region fallthrough
CT: control target
= control target key end

     0   :  { %vm70_vm0 = vcmask 130048   ;;  %vm183_vm1 = vcmask 261120   ;;  %vm373_vm2 = vcmask 31744   ;;  %s588_s1 = inlined_call_operand.vmem [shape: bf16[16,32], index: 1, kind: input, shape index: {}]   ;;  %s589_s0 = inlined_call_operand.vmem [shape: bf16[64,16], index: 0, kind: input, shape index: {}]   ;;  %s590_s3 = inlined_call_operand.vmem [shape: bf16[32,32], index: 3, kind: input, shape index: {}]   ;;  %s591_s2 = inlined_call_operand.vmem [shape: f32[1,32], index: 2, kind: input, shape index: {}]   ;;  %s592_s5 = inlined_call_operand.vmem [shape: bf16[32,4], index: 5, kind: input, shape index: {}]   ;;  %s593_s4 = inlined_call_operand.vmem [shape: f32[1,32], index: 4, kind: input, shape index: {}]   ;;  %s594_s6 = inlined_call_operand.vmem [shape: f32[1,4], index: 6, kind: input, shape index: {}]   ;;  %s595_s7 = inlined_call_operand.vmem [shape: f32[64,4], index: 7, kind: output, shape index: {}]  }
   0x1   :  { %v463_v0 = vld [vmem:[%s588_s1] sm:$0xff]   ;;  %v465_v2 = vld [vmem:[%s589_s0 + $0x8] sm:$0xff]   ;;  %v466_v3 = vld [vmem:[%s589_s0 + $0x10] sm:$0xff]  }
   0x2   :  { %v464_v1 = vld [vmem:[%s589_s0] sm:$0xff]   ;;  %427 = vmatprep.subr.bf16.mxu0 %v463_v0  ;;  %461 = vmatprep.subr.bf16.mxu1 %v463_v0  ;;  %v467_v4 = vld [vmem:[%s589_s0 + $0x18] sm:$0xff]   ;;  %v469_v6 = vld [vmem:[%s590_s3 + $0x8] sm:$0xff]  }
   0x3   :  { %428 = vmatpush3.bf16.msra.mxu0 %v463_v0  ;;  %429 = vmatprep.mubr.msk.bf16.mxu0 %vm70_vm0, %v464_v1  ;;  %v468_v5 = vld [vmem:[%s590_s3] sm:$0xff]   ;;  %v471_v37 = vld [vmem:[%s592_s5 + $0x8] sm:$0xff]  }
   0x4   :  { %462 = vmatpush3.bf16.msra.mxu1 %v463_v0  ;;  %433 = vmatprep.mubr.msk.bf16.mxu1 %vm70_vm0, %v466_v3  ;;  %v386_v7 = vld [vmem:[%s591_s2] ss:$0 sm:$0xff] }
   0x5   :  { %437 = vmatprep.subr.bf16.mxu1 %v468_v5  ;;  %v470_v36 = vld [vmem:[%s592_s5] sm:$0xff]  }
   0x6   :  { %430 = vmatmul.mubr.msk.bf16.vlgmr.msra.gmra.mrb[0].mxu0 %vm70_vm0, %v465_v2  ;;  %449 = vmatprep.subr.bf16.mxu0 %v470_v36  ;;  %v396_v38 = vld [vmem:[%s593_s4] ss:$0 sm:$0xff] }
   0x7   :  { %434 = vmatmul.mubr.msk.bf16.vlgmr.msra.gmra.mrb[0].mxu1 %vm70_vm0, %v467_v4  ;;  %450 = vmatpush3.bf16.msra.mxu0 %v470_v36  ;;  %v403_v3 = vld [vmem:[%s594_s6] ss:$0 sm:$0xff] }
   0x8   :  { %438 = vmatpush3.bf16.msra.mxu1 %v468_v5  ;;  %451 = vmatprep.subr.bf16.mxu0 %v471_v37 }
   0x9   :  { %439 = vmatprep.subr.bf16.mxu1 %v469_v6 }
   0xb   :  { %452 = vmatpush3.bf16.msra.mxu0 %v471_v37 }
   0xc   :  { %440 = vmatpush3.bf16.msra.mxu1 %v469_v6 }
  0xd9   :  { %v431_v8 = vpop.f32.mrb[0].mxu0 }
  0xda   :  { %v126_v9 = vadd.f32 %v431_v8, %v386_v7  ;;  %v117_v10 = vpop.f32.mrb[1].mxu0  ;;  %v435_v11 = vpop.f32.mrb[0].mxu1 }
  0xdb   :  { %v118_v12 = vadd.f32 %v386_v7, %v117_v10  ;;  %v432_v13 = vpop.f32.mrb[2].mxu0  ;;  %v142_v14 = vadd.f32 %v435_v11, %v386_v7  ;;  %v133_v15 = vpop.f32.mrb[1].mxu1 }
  0xdc   :  { %v129_v16 = vadd.f32 %v432_v13, %v386_v7  ;;  %v120_v17 = vpop.f32.mrb[3].mxu0  ;;  %v134_v18 = vadd.f32 %v386_v7, %v133_v15  ;;  %v436_v19 = vpop.f32.mrb[2].mxu1  ;;  %v150_v24 = vmax.f32 %v126_v9, 0.0 }
  0xdd   :  { %v121_v20 = vadd.f32 %v386_v7, %v120_v17  ;;  %v154_v21 = vmax.f32 %v142_v14, 0.0  ;;  %v145_v22 = vadd.f32 %v436_v19, %v386_v7  ;;  %v136_v23 = vpop.f32.mrb[3].mxu1  ;;  %v148_v28 = vmax.f32 %v118_v12, 0.0 }
  0xde   :  { %v151_v25 = vmax.f32 %v129_v16, 0.0  ;;  %v152_v26 = vmax.f32 %v134_v18, 0.0  ;;  %v137_v27 = vadd.f32 %v386_v7, %v136_v23 }
  0xdf   :  { %v149_v29 = vmax.f32 %v121_v20, 0.0  ;;  %v155_v30 = vmax.f32 %v145_v22, 0.0 }
  0xe0   :  { %v157_v31 = vpack.c.bf16 %v151_v25, %v150_v24  ;;  %v153_v32 = vmax.f32 %v137_v27, 0.0 }
  0xe1   :  { %v156_v33 = vpack.c.bf16 %v149_v29, %v148_v28  ;;  %v159_v34 = vpack.c.bf16 %v155_v30, %v154_v21 }
  0xe2   :  { %v158_v35 = vpack.c.bf16 %v153_v32, %v152_v26 }
  0xe3   :  { %441 = vmatprep.mubr.msk.bf16.mxu1 %vm183_vm1, %v156_v33 }
  0xe4   :  { %442 = vmatmul.mubr.msk.bf16.vlgmr.msra.gmra.mrb[4].mxu1 %vm183_vm1, %v157_v31 }
  0xe5   :  { %445 = vmatprep.mubr.msk.bf16.mxu1 %vm183_vm1, %v158_v35 }
  0xec   :  { %446 = vmatmul.mubr.msk.bf16.gmra.mrb[8].mxu1 %vm183_vm1, %v159_v34 }
 0x1b7   :  { %v443_v39 = vpop.f32.mrb[4].mxu1 }
 0x1b8   :  { %v239_v40 = vadd.f32 %v443_v39, %v396_v38  ;;  %v230_v41 = vpop.f32.mrb[5].mxu1 }
 0x1b9   :  { %v231_v42 = vadd.f32 %v396_v38, %v230_v41  ;;  %v444_v43 = vpop.f32.mrb[6].mxu1 }
 0x1ba   :  { %v242_v44 = vadd.f32 %v444_v43, %v396_v38  ;;  %v233_v45 = vpop.f32.mrb[7].mxu1  ;;  %v263_v47 = vmax.f32 %v239_v40, 0.0 }
 0x1bb   :  { %v234_v46 = vadd.f32 %v396_v38, %v233_v45  ;;  %v261_v49 = vmax.f32 %v231_v42, 0.0 }
 0x1bc   :  { %v264_v48 = vmax.f32 %v242_v44, 0.0 }
 0x1bd   :  { %v262_v50 = vmax.f32 %v234_v46, 0.0 }
 0x1be   :  { %v270_v51 = vpack.c.bf16 %v264_v48, %v263_v47 }
 0x1bf   :  { %v269_v52 = vpack.c.bf16 %v262_v50, %v261_v49  ;;  %v447_v53 = vpop.f32.mrb[8].mxu1 }
 0x1c0   :  { %v255_v54 = vadd.f32 %v447_v53, %v396_v38  ;;  %v246_v55 = vpop.f32.mrb[9].mxu1 }
 0x1c1   :  { %v247_v56 = vadd.f32 %v396_v38, %v246_v55  ;;  %v448_v57 = vpop.f32.mrb[10].mxu1  ;;  %453 = vmatprep.mubr.msk.bf16.mxu0 %vm183_vm1, %v269_v52 }
 0x1c2   :  { %v258_v58 = vadd.f32 %v448_v57, %v396_v38  ;;  %v249_v59 = vpop.f32.mrb[11].mxu1  ;;  %454 = vmatmul.mubr.msk.bf16.vlgmr.msra.gmra.mrb[4].mxu0 %vm183_vm1, %v270_v51  ;;  %v267_v61 = vmax.f32 %v255_v54, 0.0 }
 0x1c3   :  { %v250_v60 = vadd.f32 %v396_v38, %v249_v59  ;;  %v265_v63 = vmax.f32 %v247_v56, 0.0 }
 0x1c4   :  { %v268_v62 = vmax.f32 %v258_v58, 0.0 }
 0x1c5   :  { %v266_v0 = vmax.f32 %v250_v60, 0.0 }
 0x1c6   :  { %v272_v1 = vpack.c.bf16 %v268_v62, %v267_v61 }
 0x1c7   :  { %v271_v2 = vpack.c.bf16 %v266_v0, %v265_v63 }
 0x1c9   :  { %457 = vmatprep.mubr.msk.bf16.mxu0 %vm183_vm1, %v271_v2 }
 0x1ca   :  { %458 = vmatmul.mubr.msk.bf16.gmra.mrb[8].mxu0 %vm183_vm1, %v272_v1 }
 0x295   :  { %v455_v4 = vpop.f32.mrb[4].mxu0 }
 0x296   :  { %v351_v5 = vadd.f32 %v455_v4, %v403_v3  ;;  %v342_v6 = vpop.f32.mrb[5].mxu0 }
 0x297   :  { %v343_v7 = vadd.f32 %v403_v3, %v342_v6  ;;  %v456_v8 = vpop.f32.mrb[6].mxu0 }
 0x298   :  { %376 = vst.msk [vmem:[%s595_s7 + $0x10] sm:$0xff] %vm373_vm2, %v351_v5  ;;  %v354_v9 = vadd.f32 %v456_v8, %v403_v3  ;;  %v345_v10 = vpop.f32.mrb[7].mxu0 }
 0x299   :  { %374 = vst.msk [vmem:[%s595_s7] sm:$0xff] %vm373_vm2, %v343_v7  ;;  %v346_v11 = vadd.f32 %v403_v3, %v345_v10 }
 0x29a   :  { %377 = vst.msk [vmem:[%s595_s7 + $0x18] sm:$0xff] %vm373_vm2, %v354_v9 }
 0x29b   :  { %375 = vst.msk [vmem:[%s595_s7 + $0x8] sm:$0xff] %vm373_vm2, %v346_v11 }
 0x29d   :  { %v459_v12 = vpop.f32.mrb[8].mxu0 }
 0x29e   :  { %v367_v13 = vadd.f32 %v459_v12, %v403_v3  ;;  %v358_v14 = vpop.f32.mrb[9].mxu0 }
 0x29f   :  { %v359_v15 = vadd.f32 %v403_v3, %v358_v14  ;;  %v460_v16 = vpop.f32.mrb[10].mxu0 }
 0x2a0   :  { %380 = vst.msk [vmem:[%s595_s7 + $0x30] sm:$0xff] %vm373_vm2, %v367_v13  ;;  %v370_v17 = vadd.f32 %v460_v16, %v403_v3  ;;  %v361_v18 = vpop.f32.mrb[11].mxu0 }
 0x2a1   :  { %378 = vst.msk [vmem:[%s595_s7 + $0x20] sm:$0xff] %vm373_vm2, %v359_v15  ;;  %v362_v19 = vadd.f32 %v403_v3, %v361_v18 }
 0x2a2   :  { %381 = vst.msk [vmem:[%s595_s7 + $0x38] sm:$0xff] %vm373_vm2, %v370_v17 }
 0x2a3   :  { %379 = vst.msk [vmem:[%s595_s7 + $0x28] sm:$0xff] %vm373_vm2, %v362_v19 }

</bundles_post_ra>
